<compile_context>
chip_gen: v6e
topology: v6e:2x2x1
jax: 0.10.0
libtpu: 0.0.40
codegen_flags: <defaults>
</compile_context>

<pallas_src>
import functools

import jax
import jax.numpy as jnp
from jax.experimental import pallas as pl
from jax.experimental.pallas import tpu as pltpu

_MIB = 1024 * 1024
_VMEM_BUDGET = 40 * _MIB          # conservative cap so the same plan fits v7x (64 MiB)
_SMALL_PROBLEM_MACS = 1 << 24     # below this, XLA's fused GEMM beats the kernel


def _round_up(x, m):
    return (x + m - 1) // m * m


# --------------------------------- kernels ---------------------------------

def _resident_head_kernel(x_ref, wt_ref, omega_ref, calib_ref, o_ref):
    # x_ref:     (tm, D_pad)   bf16  streamed feature tile
    # wt_ref:    (D_pad, C_pad) bf16  W^T, VMEM-resident for the whole grid
    # omega_ref: (1, C_pad)    f32   resident
    # calib_ref: (1, C_pad)    f32   = omega*bias + beta*||W||_2 (precomputed), resident
    # o_ref:     (tm, C_pad)
    # Single K step -> no accumulator scratch, no pl.when phases: one dot + FMA epilogue.
    logits = jnp.dot(x_ref[...], wt_ref[...], preferred_element_type=jnp.float32)
    o_ref[...] = (omega_ref[...] * logits + calib_ref[...]).astype(o_ref.dtype)


def _tiled_head_kernel(x_ref, wt_ref, omega_ref, calib_ref, o_ref, acc_ref):
    # Fallback when W cannot stay resident: classic tiled matmul with reduction axis
    # last and an f32 VMEM accumulator.
    k = pl.program_id(2)

    @pl.when(k == 0)
    def _():
        acc_ref[...] = jnp.zeros_like(acc_ref)

    acc_ref[...] += jnp.dot(x_ref[...], wt_ref[...], preferred_element_type=jnp.float32)

    @pl.when(k == pl.num_programs(2) - 1)
    def _():
        o_ref[...] = (omega_ref[...] * acc_ref[...] + calib_ref[...]).astype(o_ref.dtype)


# --------------------------------- wrapper ----------------------------------

def _pad_cast_2d(x, rows, cols, dtype):
    """Cast then zero-pad in one pass (no intermediate padded f32 array)."""
    r, c = x.shape
    x = x.astype(dtype)
    if r == rows and c == cols:
        return x
    return jnp.zeros((rows, cols), dtype).at[:r, :c].set(x)


def _calibration_vector(fc_w, fc_b, omega, beta):
    # omega*(x@W^T + b) + beta*||W||  ==  omega*(x@W^T) + (omega*b + beta*||W||)
    # ||W|| computed from the *unpadded* fp32 weights (keeps calibration precision).
    w_norm = jnp.sqrt(jnp.sum(fc_w.astype(jnp.float32) ** 2, axis=1))          # (C,)
    return (omega.astype(jnp.float32).reshape(1, -1) * fc_b.astype(jnp.float32)[None, :]
            + beta.astype(jnp.float32).reshape(1, -1) * w_norm[None, :])       # (1, C)


def _xla_forward(feats, fc_w, fc_b, omega, beta, matmul_dtype, out_dtype):
    calib = _calibration_vector(fc_w, fc_b, omega, beta)
    logits = jnp.dot(feats.astype(matmul_dtype), fc_w.astype(matmul_dtype).T,
                     preferred_element_type=jnp.float32)
    return (omega.astype(jnp.float32).reshape(1, -1) * logits + calib).astype(out_dtype)


@functools.partial(jax.jit, static_argnames=("matmul_dtype", "out_dtype", "plan"))
def margin_calibration_forward(x_nchw, fc_w, fc_b, omega, beta, *,
                               matmul_dtype=jnp.bfloat16, out_dtype=jnp.float32,
                               plan="auto"):
    B = x_nchw.shape[0]
    C, D = fc_w.shape

    # backbone feature extractor: flatten NCHW -> (B, D), identical to torch .view(B, -1)
    feats = x_nchw.reshape(B, -1)

    op_bytes = jnp.dtype(matmul_dtype).itemsize
    out_bytes = jnp.dtype(out_dtype).itemsize

    # ------------------------- static tile plan -------------------------
    C_pad = _round_up(C, 128)                   # lane-dense outputs / weight columns
    D_pad = _round_up(D, 128)
    b16 = _round_up(max(B, 1), 16)              # bf16 sublane packing for x rows

    # footprint of the resident-W plan at the smallest batch tile (Pallas double-buffers
    # each BlockSpec input, hence the 2x factors)
    resident_w_alloc = 2 * D_pad * C_pad * op_bytes
    def _resident_footprint(tm):
        return (resident_w_alloc
                + 2 * tm * D_pad * op_bytes       # x tile
                + 2 * tm * C_pad * out_bytes      # out tile
                + 4 * C_pad * 4)                  # omega + calib
    resident_fits = _resident_footprint(16) <= _VMEM_BUDGET

    if plan == "auto":
        if b16 * C_pad * D_pad < _SMALL_PROBLEM_MACS:
            plan = "xla"
        elif resident_fits:
            plan = "resident"
        else:
            plan = "tiled"
    if plan == "resident" and not resident_fits:
        plan = "tiled"

    if plan == "xla":
        return _xla_forward(feats, fc_w, fc_b, omega, beta, matmul_dtype, out_dtype)

    # hoisted weight-only calibration vector (differentiable, plain JAX, f32)
    calib = _calibration_vector(fc_w, fc_b, omega, beta)                  # (1, C)
    omega_row = omega.astype(jnp.float32).reshape(1, -1)                  # (1, C)

    # weight transposed once in the wrapper -> kernel does a plain (tm,tk)x(tk,tn) dot
    w_t = fc_w.astype(matmul_dtype).T                                     # (D, C)

    omega_p = _pad_cast_2d(omega_row, 1, C_pad, jnp.float32)
    calib_p = _pad_cast_2d(calib, 1, C_pad, jnp.float32)
    wt_p = _pad_cast_2d(w_t, D_pad, C_pad, matmul_dtype)

    if plan == "resident":
        # -------- resident-W plan: tn = C_pad, tk = D_pad, no reduction axis --------
        candidates = [t for t in (512, 256, 128, 64, 32, 16)
                      if t <= b16 and _resident_footprint(t) <= _VMEM_BUDGET]
        if not candidates:
            tm = 16
        else:
            # prefer the largest tile that still leaves >=2 batch blocks (v7x: 2 TCs)
            two_block = [t for t in candidates if b16 // t >= 2]
            tm = two_block[0] if two_block else candidates[0]
        B_pad = _round_up(b16, tm)
        grid = (B_pad // tm,)

        feats_p = _pad_cast_2d(feats, B_pad, D_pad, matmul_dtype)

        footprint = _resident_footprint(tm)
        vmem_limit = min(48 * _MIB, max(32 * _MIB, int(footprint * 1.25)))

        out_p = pl.pallas_call(
            _resident_head_kernel,
            out_shape=jax.ShapeDtypeStruct((B_pad, C_pad), out_dtype),
            grid_spec=pltpu.PrefetchScalarGridSpec(
                num_scalar_prefetch=0,
                grid=grid,
                in_specs=[
                    pl.BlockSpec((tm, D_pad), lambda i: (i, 0)),       # x: streamed
                    pl.BlockSpec((D_pad, C_pad), lambda i: (0, 0)),    # W^T: resident
                    pl.BlockSpec((1, C_pad), lambda i: (0, 0)),        # omega: resident
                    pl.BlockSpec((1, C_pad), lambda i: (0, 0)),        # calib: resident
                ],
                out_specs=pl.BlockSpec((tm, C_pad), lambda i: (i, 0)),
            ),
            compiler_params=pltpu.CompilerParams(
                dimension_semantics=("parallel",),
                vmem_limit_bytes=vmem_limit,
            ),
            cost_estimate=pl.CostEstimate(
                flops=2 * B_pad * C_pad * D_pad,
                transcendentals=0,
                bytes_accessed=(B_pad * D_pad + D_pad * C_pad) * op_bytes
                + B_pad * C_pad * out_bytes + 2 * C_pad * 4,
            ),
        )(feats_p, wt_p, omega_p, calib_p)

    else:
        # -------- tiled fallback with K reduction (vocab-sized class_num, huge D) ----
        tk = 128
        for cand in (512, 256, 128):
            if D_pad % cand == 0:
                tk = cand
                break
        tn = 512 if C_pad % 512 == 0 else (256 if C_pad % 256 == 0 else 128)
        tm_cands = [t for t in (256, 128, 64, 32, 16) if t <= b16]
        tm = tm_cands[0] if tm_cands else 16
        B_pad = _round_up(b16, tm)
        grid = (B_pad // tm, C_pad // tn, D_pad // tk)

        feats_p = _pad_cast_2d(feats, B_pad, D_pad, matmul_dtype)

        out_p = pl.pallas_call(
            _tiled_head_kernel,
            out_shape=jax.ShapeDtypeStruct((B_pad, C_pad), out_dtype),
            grid_spec=pltpu.PrefetchScalarGridSpec(
                num_scalar_prefetch=0,
                grid=grid,
                in_specs=[
                    pl.BlockSpec((tm, tk), lambda i, j, k: (i, k)),    # x
                    pl.BlockSpec((tk, tn), lambda i, j, k: (k, j)),    # W^T
                    pl.BlockSpec((1, tn), lambda i, j, k: (0, j)),     # omega
                    pl.BlockSpec((1, tn), lambda i, j, k: (0, j)),     # calib
                ],
                out_specs=pl.BlockSpec((tm, tn), lambda i, j, k: (i, j)),
                scratch_shapes=[pltpu.VMEM((tm, tn), jnp.float32)],
            ),
            compiler_params=pltpu.CompilerParams(
                dimension_semantics=("parallel", "parallel", "arbitrary"),
                vmem_limit_bytes=32 * _MIB,   # v5e scoped default is only 16 MiB
            ),
            cost_estimate=pl.CostEstimate(
                flops=2 * B_pad * C_pad * D_pad,
                transcendentals=0,
                bytes_accessed=(B_pad * D_pad * (C_pad // tn)
                                + D_pad * C_pad * (B_pad // tm)) * op_bytes
                + B_pad * C_pad * out_bytes + 2 * C_pad * 4,
            ),
        )(feats_p, wt_p, omega_p, calib_p)

    return out_p[:B, :C]


# ----------------------------------- test -----------------------------------

if __name__ == "__main__":
    # Small shapes consistent with the module: NCHW conv-style input.
    B, Cin, H, W = 2, 4, 16, 16
    class_num = 10
    D = Cin * H * W

    key = jax.random.PRNGKey(0)
    kx, kw, kb, ko, kbe = jax.random.split(key, 5)

    x = jax.random.normal(kx, (B, Cin, H, W), dtype=jnp.float32)
    # torch.nn.Linear(D, class_num): weight (class_num, D), bias (class_num,)
    fc_w = jax.random.normal(kw, (class_num, D), dtype=jnp.float32) * 0.02
    fc_b = jax.random.normal(kb, (class_num,), dtype=jnp.float32) * 0.01

    def reference(x, fc_w, fc_b, omega, beta):
        feats = x.reshape(x.shape[0], -1)
        # Match the bf16-operand / f32-accumulate MXU matmul used in every path.
        logits = jnp.dot(feats.astype(jnp.bfloat16), fc_w.astype(jnp.bfloat16).T,
                         preferred_element_type=jnp.float32) + fc_b[None, :]
        w_norm = jnp.linalg.norm(fc_w, axis=1)[None, :]
        return omega * logits + beta * w_norm

    # (a) module __init__ values: omega = ones(1, C), beta = zeros(1, C)
    omega = jnp.ones((1, class_num), dtype=jnp.float32)
    beta = jnp.zeros((1, class_num), dtype=jnp.float32)
    ref = reference(x, fc_w, fc_b, omega, beta)

    out_res = jax.block_until_ready(
        margin_calibration_forward(x, fc_w, fc_b, omega, beta, plan="resident"))
    assert out_res.shape == (B, class_num)
    assert jnp.allclose(out_res, ref, atol=2e-3, rtol=2e-3), "mismatch (resident plan)"

    out_tiled = jax.block_until_ready(
        margin_calibration_forward(x, fc_w, fc_b, omega, beta, plan="tiled"))
    assert jnp.allclose(out_tiled, ref, atol=2e-3, rtol=2e-3), "mismatch (tiled plan)"

    # auto-dispatch (small problem -> XLA GEMM) must agree too
    out_auto = jax.block_until_ready(
        margin_calibration_forward(x, fc_w, fc_b, omega, beta))
    assert jnp.allclose(out_auto, ref, atol=2e-3, rtol=2e-3), "mismatch (auto dispatch)"

    # (b) non-trivial omega/beta to also exercise the calibration term
    omega2 = 1.0 + 0.1 * jax.random.normal(ko, (1, class_num), dtype=jnp.float32)
    beta2 = 0.1 * jax.random.normal(kbe, (1, class_num), dtype=jnp.float32)
    ref2 = reference(x, fc_w, fc_b, omega2, beta2)
    out2 = jax.block_until_ready(
        margin_calibration_forward(x, fc_w, fc_b, omega2, beta2, plan="resident"))
    assert jnp.allclose(out2, ref2, atol=2e-3, rtol=2e-3), "mismatch (random omega/beta)"

    print("KERNEL_OK")
</pallas_src>

<mosaic_0001>
module attributes {stable_mosaic.version = 11 : i64} {
  func.func @_resident_head_kernel(%arg0: i32, %arg1: memref<16x1024xbf16, #tpu.memory_space<vmem>>, %arg2: memref<1024x128xbf16, #tpu.memory_space<vmem>>, %arg3: memref<1x128xf32, #tpu.memory_space<vmem>>, %arg4: memref<1x128xf32, #tpu.memory_space<vmem>>, %arg5: memref<16x128xf32, #tpu.memory_space<vmem>>) attributes {dimension_semantics = [#tpu.dimension_semantics<parallel>], iteration_bounds = array<i64: 1>, scalar_prefetch = 0 : i64, scratch_operands = 0 : i64, tpu.core_type = #tpu.core_type<tc>, window_params = [{transform_indices = @transform_0, window_bounds = array<i64: 16, 1024>}, {pipeline_mode = #tpu.pipeline_mode<synchronous>, transform_indices = @transform_1, window_bounds = array<i64: 1024, 128>}, {pipeline_mode = #tpu.pipeline_mode<synchronous>, transform_indices = @transform_2, window_bounds = array<i64: 1, 128>}, {pipeline_mode = #tpu.pipeline_mode<synchronous>, transform_indices = @transform_3, window_bounds = array<i64: 1, 128>}, {transform_indices = @transform_4, window_bounds = array<i64: 16, 128>}]} {
    %c0 = arith.constant 0 : index
    %c0_0 = arith.constant 0 : index
    %0 = vector.load %arg1[%c0, %c0_0] : memref<16x1024xbf16, #tpu.memory_space<vmem>>, vector<16x1024xbf16>
    %c0_1 = arith.constant 0 : index
    %c0_2 = arith.constant 0 : index
    %1 = vector.load %arg2[%c0_1, %c0_2] : memref<1024x128xbf16, #tpu.memory_space<vmem>>, vector<1024x128xbf16>
    %cst = arith.constant dense<0.000000e+00> : vector<16x128xf32>
    %2 = tpu.matmul %0, %1, %cst {dimension_numbers = #tpu.dot_dimension_numbers<[1], [0], [0], [1], [0, 0, 1, 1], [], []>} : vector<16x1024xbf16>, vector<1024x128xbf16>, vector<16x128xf32> -> vector<16x128xf32>
    %c0_3 = arith.constant 0 : index
    %c0_4 = arith.constant 0 : index
    %3 = vector.load %arg3[%c0_3, %c0_4] : memref<1x128xf32, #tpu.memory_space<vmem>>, vector<1x128xf32>
    %4 = vector.broadcast %3 : vector<1x128xf32> to vector<16x128xf32>
    %5 = arith.mulf %4, %2 : vector<16x128xf32>
    %c0_5 = arith.constant 0 : index
    %c0_6 = arith.constant 0 : index
    %6 = vector.load %arg4[%c0_5, %c0_6] : memref<1x128xf32, #tpu.memory_space<vmem>>, vector<1x128xf32>
    %7 = vector.broadcast %6 : vector<1x128xf32> to vector<16x128xf32>
    %8 = arith.addf %5, %7 : vector<16x128xf32>
    %c0_7 = arith.constant 0 : index
    %c0_8 = arith.constant 0 : index
    %9 = vector.load %arg5[%c0_7, %c0_8] : memref<16x128xf32, #tpu.memory_space<vmem>>, vector<16x128xf32>
    tpu.vector_store %arg5[%c0_7, %c0_8], %8 {strides = array<i32>} : memref<16x128xf32, #tpu.memory_space<vmem>>, vector<16x128xf32>,
    return
  }
  func.func @transform_0(%arg0: i32) -> (i32, i32) {
    %c0_i32 = arith.constant 0 : i32
    %c0_i32_0 = arith.constant 0 : i32
    return %arg0, %c0_i32 : i32, i32
  }
  func.func @transform_1(%arg0: i32) -> (i32, i32) {
    %c0_i32 = arith.constant 0 : i32
    %c0_i32_0 = arith.constant 0 : i32
    %c0_i32_1 = arith.constant 0 : i32
    return %c0_i32, %c0_i32_0 : i32, i32
  }
  func.func @transform_2(%arg0: i32) -> (i32, i32) {
    %c0_i32 = arith.constant 0 : i32
    %c0_i32_0 = arith.constant 0 : i32
    %c0_i32_1 = arith.constant 0 : i32
    return %c0_i32, %c0_i32_0 : i32, i32
  }
  func.func @transform_3(%arg0: i32) -> (i32, i32) {
    %c0_i32 = arith.constant 0 : i32
    %c0_i32_0 = arith.constant 0 : i32
    %c0_i32_1 = arith.constant 0 : i32
    return %c0_i32, %c0_i32_0 : i32, i32
  }
  func.func @transform_4(%arg0: i32) -> (i32, i32) {
    %c0_i32 = arith.constant 0 : i32
    %c0_i32_0 = arith.constant 0 : i32
    return %arg0, %c0_i32 : i32, i32
  }
}

</mosaic_0001>

<bundles_post_ra>
// kernel: margin_calibration_forward.1
= control target key start
LH: loop header
LB: loop body
LE: loop exit
PB: predicated region body
PF: predicated region fallthrough
CT: control target
= control target key end

     0   :  { %s1245_s1 = inlined_call_operand.vmem [shape: bf16[1024,128], index: 1, kind: input, shape index: {}]   ;;  %s1246_s0 = inlined_call_operand.vmem [shape: bf16[16,1024], index: 0, kind: input, shape index: {}]   ;;  %s1247_s2 = inlined_call_operand.vmem [shape: f32[1,128], index: 2, kind: input, shape index: {}]   ;;  %s1248_s3 = inlined_call_operand.vmem [shape: f32[1,128], index: 3, kind: input, shape index: {}]   ;;  %s1249_s4 = inlined_call_operand.vmem [shape: f32[16,128], index: 4, kind: output, shape index: {}]  }
   0x1   :  { %v928_v0 = vld [vmem:[%s1245_s1 + $0x78] sm:$0xff]   ;;  %v932_v4 = vld [vmem:[%s1245_s1 + $0x70] sm:$0xff]   ;;  %v936_v8 = vld [vmem:[%s1245_s1 + $0x68] sm:$0xff]  }
   0x2   :  { %v929_v1 = vld [vmem:[%s1245_s1 + $0xf8] sm:$0xff]   ;;  %840 = vmatprep.subr.bf16.mxu0 %v928_v0  ;;  %v933_v5 = vld [vmem:[%s1245_s1 + $0xf0] sm:$0xff]   ;;  %v937_v9 = vld [vmem:[%s1245_s1 + $0xe8] sm:$0xff]  }
   0x3   :  { %v930_v2 = vld [vmem:[%s1245_s1 + $0x38] sm:$0xff]   ;;  %862 = vmatprep.subr.bf16.mxu1 %v929_v1  ;;  %v934_v6 = vld [vmem:[%s1245_s1 + $0x30] sm:$0xff]   ;;  %v938_v10 = vld [vmem:[%s1245_s1 + $0x28] sm:$0xff]  }
   0x4   :  { %v931_v3 = vld [vmem:[%s1245_s1 + $0xb8] sm:$0xff]   ;;  %841 = vmatpush3.bf16.msra.mxu0 %v930_v2  ;;  %v935_v7 = vld [vmem:[%s1245_s1 + $0xb0] sm:$0xff]   ;;  %v939_v11 = vld [vmem:[%s1245_s1 + $0xa8] sm:$0xff]  }
   0x5   :  { %863 = vmatpush3.bf16.msra.mxu1 %v931_v3  ;;  %842 = vmatprep.subr.bf16.mxu0 %v932_v4  ;;  %v940_v12 = vld [vmem:[%s1245_s1 + $0x60] sm:$0xff]   ;;  %v944_v16 = vld [vmem:[%s1245_s1 + $0x58] sm:$0xff]   ;;  %v948_v20 = vld [vmem:[%s1245_s1 + $0x50] sm:$0xff]  }
   0x6   :  { %864 = vmatprep.subr.bf16.mxu1 %v933_v5  ;;  %v941_v13 = vld [vmem:[%s1245_s1 + $0xe0] sm:$0xff]   ;;  %v945_v17 = vld [vmem:[%s1245_s1 + $0xd8] sm:$0xff]   ;;  %v949_v21 = vld [vmem:[%s1245_s1 + $0xd0] sm:$0xff]  }
   0x7   :  { %v942_v14 = vld [vmem:[%s1245_s1 + $0x20] sm:$0xff]   ;;  %v946_v18 = vld [vmem:[%s1245_s1 + $0x18] sm:$0xff]   ;;  %v950_v22 = vld [vmem:[%s1245_s1 + $0x10] sm:$0xff]  }
   0x8   :  { %843 = vmatpush3.bf16.msra.mxu0 %v934_v6  ;;  %v943_v15 = vld [vmem:[%s1245_s1 + $0xa0] sm:$0xff]   ;;  %v947_v19 = vld [vmem:[%s1245_s1 + $0x98] sm:$0xff]   ;;  %v951_v23 = vld [vmem:[%s1245_s1 + $0x90] sm:$0xff]  }
   0x9   :  { %865 = vmatpush3.bf16.msra.mxu1 %v935_v7  ;;  %844 = vmatprep.subr.bf16.mxu0 %v936_v8  ;;  %v952_v24 = vld [vmem:[%s1245_s1 + $0x48] sm:$0xff]   ;;  %v956_v28 = vld [vmem:[%s1245_s1 + $0x40] sm:$0xff]   ;;  %v960_v40 = vld [vmem:[%s1245_s1 + $0x178] sm:$0xff]  }
   0xa   :  { %866 = vmatprep.subr.bf16.mxu1 %v937_v9  ;;  %v953_v25 = vld [vmem:[%s1245_s1 + $0xc8] sm:$0xff]   ;;  %v957_v29 = vld [vmem:[%s1245_s1 + $0xc0] sm:$0xff]   ;;  %v961_v41 = vld [vmem:[%s1245_s1 + $0x1f8] sm:$0xff]  }
   0xb   :  { %v954_v26 = vld [vmem:[%s1245_s1 + $0x8] sm:$0xff]   ;;  %v958_v30 = vld [vmem:[%s1245_s1] sm:$0xff]   ;;  %v962_v42 = vld [vmem:[%s1245_s1 + $0x138] sm:$0xff]  }
   0xc   :  { %845 = vmatpush3.bf16.msra.mxu0 %v938_v10  ;;  %v955_v27 = vld [vmem:[%s1245_s1 + $0x88] sm:$0xff]   ;;  %v959_v31 = vld [vmem:[%s1245_s1 + $0x80] sm:$0xff]   ;;  %v963_v43 = vld [vmem:[%s1245_s1 + $0x1b8] sm:$0xff]  }
   0xd   :  { %867 = vmatpush3.bf16.msra.mxu1 %v939_v11  ;;  %846 = vmatprep.subr.bf16.mxu0 %v940_v12  ;;  %v18_v32 = vld [vmem:[%s1246_s0] sm:$0xff]  ;;  %v19_v34 = vld [vmem:[%s1246_s0 + $0x8] sm:$0xff]  ;;  %v964_v44 = vld [vmem:[%s1245_s1 + $0x170] sm:$0xff]  }
   0xe   :  { %868 = vmatprep.subr.bf16.mxu1 %v941_v13  ;;  %v22_v33 = vld [vmem:[%s1246_s0 + $0x20] sm:$0xff]  ;;  %v23_v37 = vld [vmem:[%s1246_s0 + $0x28] sm:$0xff]  ;;  %v965_v45 = vld [vmem:[%s1245_s1 + $0x1f0] sm:$0xff]  }
   0xf   :  { %v766_v35 = vcombine.low %v18_v32, %v22_v33  ;;  %v767_v36 = vcombine.high %v18_v32, %v22_v33  ;;  %v768_v38 = vcombine.low %v19_v34, %v23_v37  ;;  %v769_v39 = vcombine.high %v19_v34, %v23_v37  ;;  %v966_v46 = vld [vmem:[%s1245_s1 + $0x130] sm:$0xff]   ;;  %v968_v48 = vld [vmem:[%s1245_s1 + $0x168] sm:$0xff]   ;;  %v972_v52 = vld [vmem:[%s1245_s1 + $0x160] sm:$0xff]  }
  0x10   :  { %847 = vmatpush3.bf16.msra.mxu0 %v942_v14  ;;  %v967_v47 = vld [vmem:[%s1245_s1 + $0x1b0] sm:$0xff]   ;;  %v969_v49 = vld [vmem:[%s1245_s1 + $0x1e8] sm:$0xff]   ;;  %v973_v53 = vld [vmem:[%s1245_s1 + $0x1e0] sm:$0xff]  }
  0x11   :  { %869 = vmatpush3.bf16.msra.mxu1 %v943_v15  ;;  %848 = vmatprep.subr.bf16.mxu0 %v944_v16  ;;  %v970_v50 = vld [vmem:[%s1245_s1 + $0x128] sm:$0xff]   ;;  %v974_v54 = vld [vmem:[%s1245_s1 + $0x120] sm:$0xff]   ;;  %v976_v56 = vld [vmem:[%s1245_s1 + $0x158] sm:$0xff]  }
  0x12   :  { %870 = vmatprep.subr.bf16.mxu1 %v945_v17  ;;  %610 = vmatprep.mubr.bf16.mxu0 %v767_v36  ;;  %v971_v51 = vld [vmem:[%s1245_s1 + $0x1a8] sm:$0xff]   ;;  %v975_v55 = vld [vmem:[%s1245_s1 + $0x1a0] sm:$0xff]   ;;  %v977_v57 = vld [vmem:[%s1245_s1 + $0x1d8] sm:$0xff]  }
  0x13   :  { %651 = vmatprep.mubr.bf16.mxu1 %v769_v39  ;;  %v978_v58 = vld [vmem:[%s1245_s1 + $0x118] sm:$0xff]   ;;  %v980_v60 = vld [vmem:[%s1245_s1 + $0x150] sm:$0xff]   ;;  %v984_v0 = vld [vmem:[%s1245_s1 + $0x148] sm:$0xff]  }
  0x14   :  { %849 = vmatpush3.bf16.msra.mxu0 %v946_v18  ;;  %v979_v59 = vld [vmem:[%s1245_s1 + $0x198] sm:$0xff]   ;;  %v981_v61 = vld [vmem:[%s1245_s1 + $0x1d0] sm:$0xff]   ;;  %v985_v1 = vld [vmem:[%s1245_s1 + $0x1c8] sm:$0xff]  }
  0x15   :  { %871 = vmatpush3.bf16.msra.mxu1 %v947_v19  ;;  %850 = vmatprep.subr.bf16.mxu0 %v948_v20  ;;  %v982_v62 = vld [vmem:[%s1245_s1 + $0x110] sm:$0xff]   ;;  %v986_v2 = vld [vmem:[%s1245_s1 + $0x108] sm:$0xff]   ;;  %v988_v4 = vld [vmem:[%s1245_s1 + $0x140] sm:$0xff]  }
  0x16   :  { %872 = vmatprep.subr.bf16.mxu1 %v949_v21  ;;  %v983_v63 = vld [vmem:[%s1245_s1 + $0x190] sm:$0xff]   ;;  %v987_v3 = vld [vmem:[%s1245_s1 + $0x188] sm:$0xff]   ;;  %v989_v5 = vld [vmem:[%s1245_s1 + $0x1c0] sm:$0xff]  }
  0x17   :  { %v990_v6 = vld [vmem:[%s1245_s1 + $0x100] sm:$0xff]   ;;  %v20_v8 = vld [vmem:[%s1246_s0 + $0x10] sm:$0xff]  ;;  %v21_v12 = vld [vmem:[%s1246_s0 + $0x18] sm:$0xff] }
  0x18   :  { %851 = vmatpush3.bf16.msra.mxu0 %v950_v22  ;;  %v991_v7 = vld [vmem:[%s1245_s1 + $0x180] sm:$0xff]   ;;  %v24_v9 = vld [vmem:[%s1246_s0 + $0x30] sm:$0xff]  ;;  %v25_v13 = vld [vmem:[%s1246_s0 + $0x38] sm:$0xff] }
  0x19   :  { %873 = vmatpush3.bf16.msra.mxu1 %v951_v23  ;;  %852 = vmatprep.subr.bf16.mxu0 %v952_v24  ;;  %v770_v10 = vcombine.low %v20_v8, %v24_v9  ;;  %v771_v11 = vcombine.high %v20_v8, %v24_v9  ;;  %v772_v14 = vcombine.low %v21_v12, %v25_v13 }
  0x1a   :  { %874 = vmatprep.subr.bf16.mxu1 %v953_v25  ;;  %v773_v15 = vcombine.high %v21_v12, %v25_v13 }
  0x1c   :  { %853 = vmatpush3.bf16.msra.mxu0 %v954_v26 }
  0x1d   :  { %875 = vmatpush3.bf16.msra.mxu1 %v955_v27  ;;  %854 = vmatprep.subr.bf16.mxu0 %v956_v28 }
  0x1e   :  { %876 = vmatprep.subr.bf16.mxu1 %v957_v29 }
  0x20   :  { %855 = vmatpush3.bf16.msra.mxu0 %v958_v30 }
  0x21   :  { %877 = vmatpush3.bf16.msra.mxu1 %v959_v31  ;;  %884 = vmatprep.subr.bf16.mxu0 %v960_v40 }
  0x22   :  { %906 = vmatprep.subr.bf16.mxu1 %v961_v41 }
  0x23   :  { %611 = vmatmul.mubr.bf16.vlgmr.msra.gmra.mxu0 %v766_v35 }
  0x24   :  { %652 = vmatmul.mubr.bf16.vlgmr.msra.gmra.mxu1 %v768_v38  ;;  %885 = vmatpush3.bf16.msra.mxu0 %v962_v42  ;;  %v838_v38 = vld [vmem:[%s1247_s2] ss:$0 sm:$0xff] }
  0x25   :  { %907 = vmatpush3.bf16.msra.mxu1 %v963_v43  ;;  %886 = vmatprep.subr.bf16.mxu0 %v964_v44  ;;  %v839_v44 = vld [vmem:[%s1248_s3] ss:$0 sm:$0xff] }
  0x26   :  { %908 = vmatprep.subr.bf16.mxu1 %v965_v45  ;;  %692 = vmatprep.mubr.bf16.mxu0 %v771_v11 }
  0x27   :  { %733 = vmatprep.mubr.bf16.mxu1 %v773_v15 }
  0x28   :  { %887 = vmatpush3.bf16.msra.mxu0 %v966_v46 }
  0x29   :  { %909 = vmatpush3.bf16.msra.mxu1 %v967_v47  ;;  %888 = vmatprep.subr.bf16.mxu0 %v968_v48 }
  0x2a   :  { %910 = vmatprep.subr.bf16.mxu1 %v969_v49 }
  0x2c   :  { %889 = vmatpush3.bf16.msra.mxu0 %v970_v50 }
  0x2d   :  { %911 = vmatpush3.bf16.msra.mxu1 %v971_v51  ;;  %890 = vmatprep.subr.bf16.mxu0 %v972_v52 }
  0x2e   :  { %912 = vmatprep.subr.bf16.mxu1 %v973_v53 }
  0x30   :  { %891 = vmatpush3.bf16.msra.mxu0 %v974_v54 }
  0x31   :  { %913 = vmatpush3.bf16.msra.mxu1 %v975_v55  ;;  %892 = vmatprep.subr.bf16.mxu0 %v976_v56 }
  0x32   :  { %914 = vmatprep.subr.bf16.mxu1 %v977_v57 }
  0x34   :  { %893 = vmatpush3.bf16.msra.mxu0 %v978_v58 }
  0x35   :  { %915 = vmatpush3.bf16.msra.mxu1 %v979_v59  ;;  %894 = vmatprep.subr.bf16.mxu0 %v980_v60 }
  0x36   :  { %916 = vmatprep.subr.bf16.mxu1 %v981_v61 }
  0x38   :  { %895 = vmatpush3.bf16.msra.mxu0 %v982_v62 }
  0x39   :  { %917 = vmatpush3.bf16.msra.mxu1 %v983_v63  ;;  %896 = vmatprep.subr.bf16.mxu0 %v984_v0 }
  0x3a   :  { %918 = vmatprep.subr.bf16.mxu1 %v985_v1 }
  0x3c   :  { %897 = vmatpush3.bf16.msra.mxu0 %v986_v2 }
  0x3d   :  { %919 = vmatpush3.bf16.msra.mxu1 %v987_v3  ;;  %898 = vmatprep.subr.bf16.mxu0 %v988_v4 }
  0x3e   :  { %920 = vmatprep.subr.bf16.mxu1 %v989_v5 }
  0x40   :  { %899 = vmatpush3.bf16.msra.mxu0 %v990_v6 }
  0x41   :  { %921 = vmatpush3.bf16.msra.mxu1 %v991_v7 }
  0x43   :  { %693 = vmatmul.mubr.bf16.vlgmr.msra.gmra.mxu0 %v770_v10 }
  0x44   :  { %734 = vmatmul.mubr.bf16.vlgmr.msra.gmra.mxu1 %v772_v14 }
  0xe3   :  { %v856_v16 = vpop.f32.mrf.mxu0 }
  0xe4   :  { %v878_v17 = vpop.f32.mrf.mxu1 }
  0xe5   :  { %v857_v18 = vpop.f32.mrf.mxu0 }
  0xe6   :  { %v879_v19 = vpop.f32.mrf.mxu1  ;;  %v858_v23 = vadd.f32 %v857_v18, %v856_v16 }
  0xe7   :  { %v859_v20 = vpop.f32.mrf.mxu0  ;;  %v880_v24 = vadd.f32 %v879_v19, %v878_v17 }
  0xe8   :  { %v881_v21 = vpop.f32.mrf.mxu1 }
  0xe9   :  { %v860_v22 = vpop.f32.mrf.mxu0  ;;  %v654_v29 = vadd.f32 %v880_v24, %v858_v23 }
  0xea   :  { %v882_v25 = vpop.f32.mrf.mxu1  ;;  %v861_v30 = vadd.f32 %v860_v22, %v859_v20 }
  0xeb   :  { %v883_v31 = vadd.f32 %v882_v25, %v881_v21 }
  0xed   :  { %v657_v40 = vadd.f32 %v883_v31, %v861_v30 }
 0x103   :  { %v900_v26 = vpop.f32.mrf.mxu0 }
 0x104   :  { %v922_v27 = vpop.f32.mrf.mxu1 }
 0x105   :  { %v901_v28 = vpop.f32.mrf.mxu0 }
 0x106   :  { %v902_v32 = vadd.f32 %v901_v28, %v900_v26  ;;  %v923_v33 = vpop.f32.mrf.mxu1 }
 0x107   :  { %v903_v34 = vpop.f32.mrf.mxu0  ;;  %v924_v36 = vadd.f32 %v923_v33, %v922_v27 }
 0x108   :  { %v695_v35 = vadd.f32 %v902_v32, %v654_v29  ;;  %v925_v37 = vpop.f32.mrf.mxu1 }
 0x109   :  { %v904_v39 = vpop.f32.mrf.mxu0 }
 0x10a   :  { %v736_v41 = vadd.f32 %v924_v36, %v695_v35  ;;  %v905_v42 = vadd.f32 %v904_v39, %v903_v34  ;;  %v926_v43 = vpop.f32.mrf.mxu1 }
 0x10b   :  { %v927_v47 = vadd.f32 %v926_v43, %v925_v37 }
 0x10c   :  { %v749_v45 = vmul.f32 %v838_v38, %v736_v41  ;;  %v698_v46 = vadd.f32 %v905_v42, %v657_v40 }
 0x10e   :  { %v758_v48 = vadd.f32 %v839_v44, %v749_v45  ;;  %v739_v49 = vadd.f32 %v927_v47, %v698_v46 }
 0x110   :  { %760 = vst [vmem:[%s1249_s4] sm:$0xff] %v758_v48  ;;  %v750_v50 = vmul.f32 %v838_v38, %v739_v49 }
 0x112   :  { %v759_v51 = vadd.f32 %v839_v44, %v750_v50 }
 0x114   :  { %761 = vst [vmem:[%s1249_s4 + $0x8] sm:$0xff] %v759_v51 }

</bundles_post_ra>
